<compile_context>
chip_gen: v5e
topology: v5e:2x2
jax: 0.10.0
libtpu: 0.0.40
codegen_flags: <defaults>
</compile_context>

<pallas_src>
import functools

import jax
import jax.numpy as jnp
from jax import lax
from jax.experimental import pallas as pl
from jax.experimental.pallas import tpu as pltpu

INPUT_SIZE = 5
LAYER1_SIZE = 10
LAYER2_SIZE = 8
OUTPUT_SIZE = 5

# Padded parameter extents (8-row sublane-stripe aligned loads, no straddling).
H1_PAD = 16          # layer-1 output rows padded 10 -> 16 (two full 8-row stripes)
W3_PAD = 8           # layer-3 output rows padded 5 -> 8 (one full 8-row stripe)
NEG_BIG = -1e30      # pad-logit bias: exp(NEG_BIG - m) == 0, keeps softmax exact

# Packed-parameter slab: one (16, 128) f32 array, one DMA, VMEM-resident across
# the whole batch grid (constant index_map).  Column layout:
_C_W1 = 0                                   # rows 0:16, cols 0:5   (rows 10:16 zero)
_C_B1 = _C_W1 + INPUT_SIZE                  # rows 0:16, col 5      (rows 10:16 zero)
_C_W2 = _C_B1 + 1                           # rows 0:8,  cols 6:22  (cols 16:22 zero)
_C_B2 = _C_W2 + H1_PAD                      # rows 0:8,  col 22
_C_W3 = _C_B2 + 1                           # rows 0:8,  cols 23:31 (rows 5:8 zero)
_C_B3 = _C_W3 + LAYER2_SIZE                 # rows 0:8,  col 31     (rows 5:8 = -1e30)
_C_SEL = _C_B3 + 1                          # rows 0:8,  cols 32:37 = [I5; 0] selector
PACK_ROWS = 16
PACK_COLS = 128

# Adaptive batch-tile policy.
_MAX_TILE = 8192     # (tile,5) f32 block is lane-padded to tile*512 B in VMEM;
                     # 2 blocks x 2 buffers at 8192 rows = 16 MiB -> fits everywhere.
_MIN_SPLIT = 1024    # only split into >=2 grid steps above this many rows.


def _round_up(a, b):
    return -(-a // b) * b


def _batch_tile(batch: int) -> int:
    """Adaptive batch tile (always a multiple of 8 sublanes).

    - Small batches: one tile that exactly covers round_up(batch, 8) -> no
      wasted DMA/compute on the latency path.
    - Medium batches: ~half the batch -> 2 grid steps so both v7x TensorCores
      get work through the "parallel" grid axis.
    - Large batches: capped at _MAX_TILE; the grid amortizes the ~0.35 us/step
      overhead and bounds the double-buffered VMEM footprint.
    """
    padded = _round_up(batch, 8)
    if padded <= _MIN_SPLIT:
        return padded
    if padded <= 2 * _MAX_TILE:
        return _round_up(-(-padded // 2), 8)
    return _MAX_TILE


def _sigmoid(x):
    # Exactly sigma(x) = 0.5*(tanh(x/2)+1): one EUP op instead of exp + divide.
    return 0.5 * (jnp.tanh(0.5 * x) + 1.0)


def mlp_kernel(p_ref, x_ref, o_ref):
    f32 = jnp.float32
    x = x_ref[...]                                            # (T, 5) batch-major block

    # All slab loads use 0:8 or 0:16 row ranges -> no 8-row stripe straddling.
    w1 = p_ref[0:H1_PAD, _C_W1:_C_W1 + INPUT_SIZE]            # (16, 5)
    b1 = p_ref[0:H1_PAD, _C_B1:_C_B1 + 1]                     # (16, 1)
    w2 = p_ref[0:LAYER2_SIZE, _C_W2:_C_W2 + H1_PAD]           # (8, 16)
    b2 = p_ref[0:LAYER2_SIZE, _C_B2:_C_B2 + 1]                # (8, 1)
    w3 = p_ref[0:W3_PAD, _C_W3:_C_W3 + LAYER2_SIZE]           # (8, 8)
    b3 = p_ref[0:W3_PAD, _C_B3:_C_B3 + 1]                     # (8, 1)
    sel = p_ref[0:W3_PAD, _C_SEL:_C_SEL + OUTPUT_SIZE]        # (8, 5) = [I5; 0]

    # Layer 1 fused with the input relayout: h1 = sigmoid(W1 @ x^T + b1) via a
    # trans_b dot_general (contract the size-5 feature dim of both operands).
    # Batch lands on the 128-lane axis with no explicit transpose op.
    h1 = _sigmoid(
        lax.dot_general(w1, x, (((1,), (1,)), ((), ())),
                        preferred_element_type=f32) + b1)     # (16, T); pad rows=0.5
    # Pad rows of h1 are killed by the zero columns 10:16 of w2.
    h2 = _sigmoid(jnp.dot(w2, h1, preferred_element_type=f32) + b2)   # (8, T)
    logits = jnp.dot(w3, h2, preferred_element_type=f32) + b3         # (8, T); rows 5:8 = -1e30

    # Softmax over the (sublane) feature axis; pad rows give exp(-1e30 - m) == 0.
    m = jnp.max(logits, axis=0, keepdims=True)                # (1, T)
    e = jnp.exp(logits - m)                                   # (8, T)
    denom = jnp.sum(e, axis=0, keepdims=True)                 # (1, T), >= 1
    r = pl.reciprocal(denom, approx=True)                     # EUP vrcp (cheap)
    r = r * (2.0 - denom * r)                                 # one Newton step -> ~exact
    probs = e * r                                             # (8, T); rows 5:8 == 0

    # Output relayout on the MXU: (8, T) feature-major -> (T, 5) batch-major by
    # contracting the 8-row feature axis against the packed [I5; 0] selector.
    # The (TILE, 5) block is then written straight back to HBM (no wrapper
    # transpose); the masked narrow stores hide under the HBM-bound DMA stream.
    out_bm = lax.dot_general(probs, sel, (((0,), (0,)), ((), ())),
                             preferred_element_type=f32)      # (T, 5)
    o_ref[...] = out_bm.astype(o_ref.dtype)


def pack_params(params):
    """Pack (W, b) triplets (PyTorch (out,in) layout) into one (16,128) slab."""
    (w1, b1), (w2, b2), (w3, b3) = params
    p = jnp.zeros((PACK_ROWS, PACK_COLS), jnp.float32)
    p = p.at[:LAYER1_SIZE, _C_W1:_C_W1 + INPUT_SIZE].set(w1)
    p = p.at[:LAYER1_SIZE, _C_B1].set(b1)
    p = p.at[:LAYER2_SIZE, _C_W2:_C_W2 + LAYER1_SIZE].set(w2)
    p = p.at[:LAYER2_SIZE, _C_B2].set(b2)
    p = p.at[:OUTPUT_SIZE, _C_W3:_C_W3 + LAYER2_SIZE].set(w3)
    p = p.at[:OUTPUT_SIZE, _C_B3].set(b3)
    # Pad logit rows 5:8 get a huge negative bias so they vanish in the softmax.
    p = p.at[OUTPUT_SIZE:W3_PAD, _C_B3].set(NEG_BIG)
    # Row selector used by the kernel to emit the batch-major output block.
    p = p.at[:OUTPUT_SIZE, _C_SEL:_C_SEL + OUTPUT_SIZE].set(
        jnp.eye(OUTPUT_SIZE, dtype=jnp.float32))
    return p


@functools.partial(jax.jit, static_argnames=())
def fully_connected_forward(x, params):
    """Pallas forward: y_pred = softmax(sigmoid-MLP(x), dim=1), shape (B, 5)."""
    assert x.shape[1] == INPUT_SIZE
    x = x.astype(jnp.float32)
    batch = x.shape[0]
    packed = pack_params(params)

    tile = _batch_tile(batch)
    grid = (pl.cdiv(batch, tile),)
    # Double-buffered in+out blocks are lane-padded to tile*512 B each; add
    # generous headroom.  Explicit so large tiles compile on v5e's 16 MiB
    # default scoped limit; max request is 32 MiB (< v7x's 64 MiB physical).
    vmem_limit = int(4 * tile * 512 + (16 << 20))

    return pl.pallas_call(
        mlp_kernel,
        out_shape=jax.ShapeDtypeStruct((batch, OUTPUT_SIZE), jnp.float32),
        grid=grid,
        in_specs=[
            # Params: one DMA, VMEM-resident across all batch tiles.
            pl.BlockSpec((PACK_ROWS, PACK_COLS), lambda i: (0, 0)),
            # x read directly in its native (B, 5) layout, tiled over batch.
            pl.BlockSpec((tile, INPUT_SIZE), lambda i: (i, 0)),
        ],
        out_specs=pl.BlockSpec((tile, OUTPUT_SIZE), lambda i: (i, 0)),
        compiler_params=pltpu.CompilerParams(
            dimension_semantics=("parallel",),
            vmem_limit_bytes=vmem_limit),
    )(packed, x)


def fully_connected(x, params, y=None):
    """Mirrors the PyTorch module's forward(x, y=None)."""
    y_pred = fully_connected_forward(x, params)
    if y is None:
        return y_pred
    # PyTorch reference: cross_entropy(y_pred, y.argmax(dim=1)).  cross_entropy
    # applies log_softmax to its input, and the reference feeds it softmax
    # *probabilities* -> the double softmax below is intentional to match.
    # TODO(synk): scalar loss head kept in plain JAX (tiny reduction, not worth a kernel).
    targets = jnp.argmax(y, axis=1)
    log_probs = jax.nn.log_softmax(y_pred, axis=1)
    nll = -jnp.take_along_axis(log_probs, targets[:, None], axis=1)[:, 0]
    return jnp.mean(nll)


def init_params(key):
    """nn.Linear-style init; W in PyTorch (out, in) layout, b shape (out,)."""
    def linear(key, fan_in, fan_out):
        kw, kb = jax.random.split(key)
        bound = 1.0 / jnp.sqrt(float(fan_in))
        w = jax.random.uniform(kw, (fan_out, fan_in), jnp.float32, -bound, bound)
        b = jax.random.uniform(kb, (fan_out,), jnp.float32, -bound, bound)
        return w, b

    k1, k2, k3 = jax.random.split(key, 3)
    return (
        linear(k1, INPUT_SIZE, LAYER1_SIZE),
        linear(k2, LAYER1_SIZE, LAYER2_SIZE),
        linear(k3, LAYER2_SIZE, OUTPUT_SIZE),
    )


def reference_forward(x, params):
    (w1, b1), (w2, b2), (w3, b3) = params
    h1 = jax.nn.sigmoid(x @ w1.T + b1)
    h2 = jax.nn.sigmoid(h1 @ w2.T + b2)
    return jax.nn.softmax(h2 @ w3.T + b3, axis=1)


if __name__ == "__main__":
    key = jax.random.PRNGKey(0)
    kp, kx, ky, kx2 = jax.random.split(key, 4)

    params = init_params(kp)

    # Small batch (latency path): a single exact-fit (8, 5) tile, grid=(1,).
    batch = 8
    x = jax.random.normal(kx, (batch, INPUT_SIZE), jnp.float32)
    y_pred = jax.block_until_ready(fully_connected(x, params))
    assert y_pred.shape == (batch, OUTPUT_SIZE)
    assert jnp.allclose(jnp.sum(y_pred, axis=1), 1.0, atol=2e-3)
    ref = reference_forward(x, params)
    assert jnp.allclose(y_pred, ref, atol=5e-3, rtol=5e-3)

    # Larger batch (throughput path): 2 grid steps of 1024 rows -> exercises the
    # batch-tiled grid and the "parallel" axis (both v7x TensorCores get a tile).
    big = 2048
    xb = jax.random.normal(kx2, (big, INPUT_SIZE), jnp.float32)
    yb = jax.block_until_ready(fully_connected(xb, params))
    refb = reference_forward(xb, params)
    assert yb.shape == (big, OUTPUT_SIZE)
    assert jnp.allclose(yb, refb, atol=5e-3, rtol=5e-3)

    # Training path (y given): cross-entropy on the kernel's y_pred.
    y_onehot = jax.nn.one_hot(
        jax.random.randint(ky, (batch,), 0, OUTPUT_SIZE), OUTPUT_SIZE,
        dtype=jnp.float32)
    loss = jax.block_until_ready(fully_connected(x, params, y_onehot))
    assert loss.shape == ()
    assert bool(jnp.isfinite(loss))

    print("KERNEL_OK")
</pallas_src>

<mosaic_0001>
module attributes {stable_mosaic.version = 11 : i64} {
  func.func @mlp_kernel(%arg0: i32, %arg1: memref<16x128xf32, #tpu.memory_space<vmem>>, %arg2: memref<8x5xf32, #tpu.memory_space<vmem>>, %arg3: memref<8x5xf32, #tpu.memory_space<vmem>>) attributes {dimension_semantics = [#tpu.dimension_semantics<parallel>], iteration_bounds = array<i64: 1>, scalar_prefetch = 0 : i64, scratch_operands = 0 : i64, tpu.core_type = #tpu.core_type<tc>, window_params = [{pipeline_mode = #tpu.pipeline_mode<synchronous>, transform_indices = @transform_0, window_bounds = array<i64: 16, 128>}, {transform_indices = @transform_1, window_bounds = array<i64: 8, 5>}, {transform_indices = @transform_2, window_bounds = array<i64: 8, 5>}]} {
    %c0 = arith.constant 0 : index
    %c0_0 = arith.constant 0 : index
    %0 = vector.load %arg2[%c0, %c0_0] : memref<8x5xf32, #tpu.memory_space<vmem>>, vector<8x5xf32>
    %c0_1 = arith.constant 0 : index
    %c0_2 = arith.constant 0 : index
    %1 = vector.load %arg1[%c0_1, %c0_2] : memref<16x128xf32, #tpu.memory_space<vmem>>, vector<16x5xf32>
    %c0_3 = arith.constant 0 : index
    %c5 = arith.constant 5 : index
    %2 = vector.load %arg1[%c0_3, %c5] : memref<16x128xf32, #tpu.memory_space<vmem>>, vector<16x1xf32>
    %c0_4 = arith.constant 0 : index
    %c6 = arith.constant 6 : index
    %3 = vector.load %arg1[%c0_4, %c6] : memref<16x128xf32, #tpu.memory_space<vmem>>, vector<8x16xf32>
    %c0_5 = arith.constant 0 : index
    %c22 = arith.constant 22 : index
    %4 = vector.load %arg1[%c0_5, %c22] : memref<16x128xf32, #tpu.memory_space<vmem>>, vector<8x1xf32>
    %c0_6 = arith.constant 0 : index
    %c23 = arith.constant 23 : index
    %5 = vector.load %arg1[%c0_6, %c23] : memref<16x128xf32, #tpu.memory_space<vmem>>, vector<8x8xf32>
    %c0_7 = arith.constant 0 : index
    %c31 = arith.constant 31 : index
    %6 = vector.load %arg1[%c0_7, %c31] : memref<16x128xf32, #tpu.memory_space<vmem>>, vector<8x1xf32>
    %c0_8 = arith.constant 0 : index
    %c32 = arith.constant 32 : index
    %7 = vector.load %arg1[%c0_8, %c32] : memref<16x128xf32, #tpu.memory_space<vmem>>, vector<8x5xf32>
    %cst = arith.constant dense<0.000000e+00> : vector<16x8xf32>
    %8 = tpu.matmul %1, %0, %cst {dimension_numbers = #tpu.dot_dimension_numbers<[1], [1], [0], [0], [0, 0, 1, 0], [], []>} : vector<16x5xf32>, vector<8x5xf32>, vector<16x8xf32> -> vector<16x8xf32>
    %9 = vector.broadcast %2 : vector<16x1xf32> to vector<16x8xf32>
    %10 = arith.addf %8, %9 : vector<16x8xf32>
    %cst_9 = arith.constant 5.000000e-01 : f32
    %11 = vector.broadcast %cst_9 : f32 to vector<16x8xf32>
    %12 = arith.mulf %11, %10 : vector<16x8xf32>
    %13 = math.tanh %12 : vector<16x8xf32>
    %cst_10 = arith.constant 1.000000e+00 : f32
    %14 = vector.broadcast %cst_10 : f32 to vector<16x8xf32>
    %15 = arith.addf %13, %14 : vector<16x8xf32>
    %cst_11 = arith.constant 5.000000e-01 : f32
    %16 = vector.broadcast %cst_11 : f32 to vector<16x8xf32>
    %17 = arith.mulf %16, %15 : vector<16x8xf32>
    %cst_12 = arith.constant dense<0.000000e+00> : vector<8x8xf32>
    %18 = tpu.matmul %3, %17, %cst_12 {dimension_numbers = #tpu.dot_dimension_numbers<[1], [0], [0], [1], [0, 0, 1, 1], [], []>} : vector<8x16xf32>, vector<16x8xf32>, vector<8x8xf32> -> vector<8x8xf32>
    %19 = vector.broadcast %4 : vector<8x1xf32> to vector<8x8xf32>
    %20 = arith.addf %18, %19 : vector<8x8xf32>
    %cst_13 = arith.constant 5.000000e-01 : f32
    %21 = vector.broadcast %cst_13 : f32 to vector<8x8xf32>
    %22 = arith.mulf %21, %20 : vector<8x8xf32>
    %23 = math.tanh %22 : vector<8x8xf32>
    %cst_14 = arith.constant 1.000000e+00 : f32
    %24 = vector.broadcast %cst_14 : f32 to vector<8x8xf32>
    %25 = arith.addf %23, %24 : vector<8x8xf32>
    %cst_15 = arith.constant 5.000000e-01 : f32
    %26 = vector.broadcast %cst_15 : f32 to vector<8x8xf32>
    %27 = arith.mulf %26, %25 : vector<8x8xf32>
    %cst_16 = arith.constant dense<0.000000e+00> : vector<8x8xf32>
    %28 = tpu.matmul %5, %27, %cst_16 {dimension_numbers = #tpu.dot_dimension_numbers<[1], [0], [0], [1], [0, 0, 1, 1], [], []>} : vector<8x8xf32>, vector<8x8xf32>, vector<8x8xf32> -> vector<8x8xf32>
    %29 = vector.broadcast %6 : vector<8x1xf32> to vector<8x8xf32>
    %30 = arith.addf %28, %29 : vector<8x8xf32>
    %cst_17 = arith.constant dense<0xFF800000> : vector<8xf32>
    %31 = vector.multi_reduction <maximumf>, %30, %cst_17 [0] : vector<8x8xf32> to vector<8xf32>
    %32 = vector.shape_cast %31 : vector<8xf32> to vector<1x8xf32>
    %33 = vector.broadcast %32 : vector<1x8xf32> to vector<8x8xf32>
    %34 = arith.subf %30, %33 : vector<8x8xf32>
    %35 = math.exp %34 : vector<8x8xf32>
    %cst_18 = arith.constant dense<0.000000e+00> : vector<8xf32>
    %36 = vector.multi_reduction <add>, %35, %cst_18 [0] : vector<8x8xf32> to vector<8xf32>
    %37 = vector.shape_cast %36 : vector<8xf32> to vector<1x8xf32>
    %38 = tpu.reciprocal %37 {approx = true} : vector<1x8xf32> -> vector<1x8xf32>
    %39 = arith.mulf %37, %38 : vector<1x8xf32>
    %cst_19 = arith.constant 2.000000e+00 : f32
    %40 = vector.broadcast %cst_19 : f32 to vector<1x8xf32>
    %41 = arith.subf %40, %39 : vector<1x8xf32>
    %42 = arith.mulf %38, %41 : vector<1x8xf32>
    %43 = vector.broadcast %42 : vector<1x8xf32> to vector<8x8xf32>
    %44 = arith.mulf %35, %43 : vector<8x8xf32>
    %cst_20 = arith.constant dense<0.000000e+00> : vector<8x5xf32>
    %45 = tpu.matmul %44, %7, %cst_20 {dimension_numbers = #tpu.dot_dimension_numbers<[0], [0], [1], [1], [0, 1, 1, 1], [], []>} : vector<8x8xf32>, vector<8x5xf32>, vector<8x5xf32> -> vector<8x5xf32>
    %c0_21 = arith.constant 0 : index
    %c0_22 = arith.constant 0 : index
    %46 = vector.load %arg3[%c0_21, %c0_22] : memref<8x5xf32, #tpu.memory_space<vmem>>, vector<8x5xf32>
    tpu.vector_store %arg3[%c0_21, %c0_22], %45 {strides = array<i32>} : memref<8x5xf32, #tpu.memory_space<vmem>>, vector<8x5xf32>,
    return
  }
  func.func @transform_0(%arg0: i32) -> (i32, i32) {
    %c0_i32 = arith.constant 0 : i32
    %c0_i32_0 = arith.constant 0 : i32
    %c0_i32_1 = arith.constant 0 : i32
    return %c0_i32, %c0_i32_0 : i32, i32
  }
  func.func @transform_1(%arg0: i32) -> (i32, i32) {
    %c0_i32 = arith.constant 0 : i32
    %c0_i32_0 = arith.constant 0 : i32
    return %arg0, %c0_i32 : i32, i32
  }
  func.func @transform_2(%arg0: i32) -> (i32, i32) {
    %c0_i32 = arith.constant 0 : i32
    %c0_i32_0 = arith.constant 0 : i32
    return %arg0, %c0_i32 : i32, i32
  }
}

</mosaic_0001>

<bundles_post_ra>
// kernel: fully_connected_forward.1
= control target key start
LH: loop header
LB: loop body
LE: loop exit
PB: predicated region body
PF: predicated region fallthrough
CT: control target
= control target key end

     0   :  { %vm26_vm0 = vcmask 39936   ;;  %v279_v3 = vmov 5   ;;  %s321_s0 = inlined_call_operand.vmem [shape: f32[16,128], index: 0, kind: input, shape index: {}]   ;;  %s322_s1 = inlined_call_operand.vmem [shape: f32[8,5], index: 1, kind: input, shape index: {}]   ;;  %s323_s2 = inlined_call_operand.hbm [shape: f32[8,5], index: 2, kind: output, shape index: {}]  }
   0x1   :  { %v12_v0 = vld [vmem:[%s322_s1] sm:$0xff]  ;;  %v14_v1 = vld [vmem:[%s321_s0 + $0x8] sm:$0xff]  ;;  %239 = vset.pattern.permute.xlu0 %v279_v3 }
   0x2   :  { %225 = vmatpush.xpose.msk.msra.mxu0 %vm26_vm0, %v12_v0  ;;  %v13_v2 = vld [vmem:[%s321_s0] sm:$0xff] }
   0x3   :  { %7 = vsyncpa [#allocation3], 0  ;;  %23 = vperm.xlu0 %239, %v14_v1   ;;  %s280_s15 = smov 122   ;;  %s281_s1 = smov 105   ;;  %v282_v5 = vmov 22   ;;  %vm72_vm1 = vcmask 130048  }
   0x4   :  { %70 = vrot.lane.b32.xlu1 %v13_v2, %s280_s15  ;;  %103 = vrot.lane.b32.xlu2 %v13_v2, %s281_s1  ;;  %v283_v20 = vmov 31   ;;  %vm105_vm2 = vcmask 64512   ;;  %s284_s0 = smov 96   ;;  %s285_s16 = smov [#allocation2]  }
   0x5   :  { %226 = vmatmul.msk.f32.vlgmr.msra.gmra.mxu0 %vm26_vm0, %v13_v2  ;;  %240 = vset.pattern.permute.xlu1 %v282_v5  ;;  %s214_s17 = sshll.u32 %s285_s16, 4  ;;  %s216_s20 = sshll.u32 %s323_s2, 4  ;;  %s215_s17 = int_to_ptr.vmem [resolvable:$true] %s214_s17  ;;  %s217_s20 = int_to_ptr.hbm [resolvable:$true] %s216_s20 }
   0x6   :  { %241 = vset.pattern.permute.xlu2 %v283_v20 }
   0xb   :  { %18 = vperm.xlu0 %239, %v13_v2  }
   0xc   :  { %67 = vperm.xlu1 %240, %v13_v2   ;;  %100 = vperm.xlu2 %241, %v13_v2  }
   0xd   :  { %227 = vmatmul.msk.f32.gmra.mxu0 %vm26_vm0, %v14_v1 }
  0x13   :  { %242 = vset.pattern.permute.xlu0 %v283_v20 }
  0x14   :  { %182 = vrot.lane.b32.xlu0 %v13_v2, %s284_s0 }
  0x5e   :  { %v104_v27 = vpop.permute.xlu2 %103 }
  0x66   :  { %v101_v29 = vpop.permute.xlu2 %100 }
  0x75   :  { %v24_v4 = vpop.permute.xlu0 %23 }
  0x76   :  { %v71_v18 = vpop.permute.xlu1 %70 }
  0x7d   :  { %v19_v6 = vpop.permute.xlu0 %18 }
  0x7e   :  { %v68_v21 = vpop.permute.xlu1 %67 }
  0x82   :  { %v51_v7 = vpop.f32.mrf.mxu0 }
  0x83   :  { %v52_v8 = vadd.f32 %v51_v7, %v19_v6 }
  0x85   :  { %v57_v9 = vmul.f32 0.5, %v52_v8 }
  0x86   :  { %v183_v49 = vpop.permute.xlu0 %182 }
  0x87   :  { %243 = vtanh.f32 %v57_v9  ;;  %203 = vmatpush.msra.mxu3 %v183_v49 }
  0x8a   :  { %v54_v10 = vpop.f32.mrf.mxu0 }
  0x8b   :  { %v55_v11 = vadd.f32 %v54_v10, %v24_v4 }
  0x8d   :  { %v58_v12 = vmul.f32 0.5, %v55_v11  ;;  %v244_v13 = vpop.eup %243 }
  0x8e   :  { %v61_v16 = vadd.f32 1.0, %v244_v13 }
  0x8f   :  { %245 = vtanh.f32 %v58_v12 }
  0x90   :  { %v63_v19 = vmul.f32 0.5, %v61_v16 }
  0x95   :  { %v246_v14 = vpop.eup %245 }
  0x96   :  { %v62_v15 = vadd.f32 1.0, %v246_v14 }
  0x98   :  { %v64_v17 = vmul.f32 0.5, %v62_v15 }
  0x9a   :  { %89 = vmatpush.msra.mxu1 %v64_v17 }
  0x9c   :  { %90 = vmatpush.msra.mxu1 %v63_v19 }
  0x9d   :  { %228 = vmatmul.msk.f32.vlgmr.msra.gmra.mxu1 %vm72_vm1, %v71_v18 }
 0x11a   :  { %v92_v22 = vpop.f32.mrf.mxu1 }
 0x11b   :  { %v93_v23 = vadd.f32 %v92_v22, %v68_v21 }
 0x11d   :  { %v95_v24 = vmul.f32 0.5, %v93_v23 }
 0x11f   :  { %247 = vtanh.f32 %v95_v24 }
 0x125   :  { %v248_v25 = vpop.eup %247 }
 0x126   :  { %v97_v26 = vadd.f32 1.0, %v248_v25 }
 0x128   :  { %v98_v28 = vmul.f32 0.5, %v97_v26 }
 0x12a   :  { %123 = vmatpush.msra.mxu2 %v98_v28 }
 0x12b   :  { %229 = vmatmul.msk.f32.vlgmr.msra.gmra.mxu2 %vm105_vm2, %v104_v27 }
 0x1ae   :  { %v125_v30 = vpop.f32.mrf.mxu2 }
 0x1af   :  { %v126_v31 = vadd.f32 %v125_v30, %v101_v29 }
 0x1b1   :  { %v128_v32 = vsel %vm105_vm2, %v126_v31, -inf }
 0x1b2   :  { %v129_v33 = vrot.slane %v128_v32, 4 }
 0x1b4   :  { %v130_v34 = vmax.f32 %v128_v32, %v129_v33 }
 0x1b6   :  { %v131_v35 = vrot.slane %v130_v34, 2 }
 0x1b8   :  { %v132_v36 = vmax.f32 %v130_v34, %v131_v35 }
 0x1ba   :  { %v133_v37 = vrot.slane %v132_v36, 1 }
 0x1bc   :  { %v134_v38 = vmax.f32 %v132_v36, %v133_v37 }
 0x1be   :  { %v135_v39 = vsub.f32 %v126_v31, %v134_v38 }
 0x1c0   :  { %v136_v40 = vmul.f32 1.442695, %v135_v39 }
 0x1c2   :  { %249 = vpow2.f32 %v136_v40 }
 0x1c8   :  { %v250_v41 = vpop.eup %249 }
 0x1c9   :  { %v138_v42 = vsel %vm105_vm2, %v250_v41, 0.0 }
 0x1ca   :  { %v139_v43 = vrot.slane %v138_v42, 4 }
 0x1cc   :  { %v140_v44 = vadd.f32 %v139_v43, %v138_v42 }
 0x1ce   :  { %v141_v45 = vrot.slane %v140_v44, 2 }
 0x1d0   :  { %v142_v46 = vadd.f32 %v141_v45, %v140_v44 }
 0x1d2   :  { %v143_v47 = vrot.slane %v142_v46, 1 }
 0x1d4   :  { %v144_v48 = vadd.f32 %v143_v47, %v142_v46 }
 0x1d6   :  { %251 = vrcp.f32 %v144_v48 }
 0x1dc   :  { %v252_v50 = vpop.eup %251 }
 0x1dd   :  { %v146_v51 = vmul.f32 %v252_v50, %v144_v48 }
 0x1df   :  { %v147_v52 = vsub.f32 2.0, %v146_v51 }
 0x1e1   :  { %v148_v53 = vmul.f32 %v252_v50, %v147_v52 }
 0x1e3   :  { %v149_v54 = vmul.f32 %v250_v41, %v148_v53 }
 0x1e5   :  { %150 = vxpose.xlu1.b32.start.end [1/1] (short) (narrow) %v149_v54, 8 }
 0x289   :  { %v166_v55 = vpop.trf.xlu1 }
 0x28a   :  { %230 = vmatmul.msk.f32.vlgmr.msra.gmra.mxu3 %vm105_vm2, %v166_v55 }
 0x30d   :  { %v205_v56 = vpop.f32.mrf.mxu3 }
 0x30e   :  { %208 = vst.msk [vmem:[#allocation2] sm:$0xff] %vm26_vm0, %v205_v56 }
 0x30f   :  { %219 = dma.vmem_to_hbm [thread:$0]  %s215_s17, 128, %s217_s20, [#allocation3]  }
 0x310   :  { %277 = dma.done.wait [#allocation3], 128  }
 0x311   :  { %278 = vsyncadd [#allocation3], 4294967168 }
 0x312   :  { %224 = vsyncpa [#allocation3], 1 }

</bundles_post_ra>
